<compile_context>
chip_gen: v6e
topology: v6e:2x2x1
jax: 0.10.0
libtpu: 0.0.40
codegen_flags: <defaults>
</compile_context>

<pallas_src>
import jax
import jax.numpy as jnp
from jax import lax
from jax.experimental import pallas as pl
from jax.experimental.pallas import tpu as pltpu

LN_EPS = 1e-5  # PyTorch nn.LayerNorm default eps


def _round_up(n: int, m: int) -> int:
    return ((n + m - 1) // m) * m


def _encoder_kernel(x_ref, w1_ref, w2_ref, p_ref, o_ref):
    # x_ref: (TB, E) f32 -> cast to bf16 on the VPU (free slot; kernel is
    # HBM-bound, so reading f32 once beats a separate wrapper cast pass).
    x = x_ref[...].astype(jnp.bfloat16)
    w1 = w1_ref[...]                      # (E, H) bf16, VMEM-resident
    w2 = w2_ref[...]                      # (H, H) bf16, VMEM-resident
    p = p_ref[...]                        # (4, H) f32: [b1; b2; gamma; beta]
    b1, b2, gamma, beta = p[0:1, :], p[1:2, :], p[2:3, :], p[3:4, :]

    # Linear 1: bf16 MXU matmul, f32 accumulation; bias + ReLU in f32.
    h = jnp.dot(x, w1, preferred_element_type=jnp.float32) + b1
    h = jnp.maximum(h, 0.0)

    # Dropout: inference / eval mode -> identity.
    # TODO(synk): training-mode dropout via pltpu.prng_seed / prng_random_bits.

    # Linear 2: cast activation to bf16 for the MXU, accumulate in f32.
    y = jnp.dot(h.astype(jnp.bfloat16), w2,
                preferred_element_type=jnp.float32) + b2

    # LayerNorm over the feature dim, all in f32 (XLU reductions + EUP rsqrt).
    mean = jnp.mean(y, axis=-1, keepdims=True)
    centered = y - mean
    var = jnp.mean(centered * centered, axis=-1, keepdims=True)
    out = centered * lax.rsqrt(var + LN_EPS) * gamma + beta

    o_ref[...] = out.astype(o_ref.dtype)


def prepare_encoder_params(w1, b1, w2, b2, gamma, beta):
    """One-time parameter prep (do this OUTSIDE the per-call path).

    Returns (w1_bf16, w2_bf16, packed) where packed is a (4, H) f32 slab
    [b1; b2; gamma; beta] -> a single DMA / VMEM buffer in the kernel.
    """
    w1_bf = jnp.asarray(w1, jnp.bfloat16)
    w2_bf = jnp.asarray(w2, jnp.bfloat16)
    packed = jnp.stack([b1, b2, gamma, beta], axis=0).astype(jnp.float32)
    return w1_bf, w2_bf, packed


def _choose_tb(B: int, block_b: int) -> int:
    """Batch tile: multiple of 8 (or the full batch dim if B < 8), never larger
    than B, and split into >=2 steps for large batches (v7x megacore)."""
    block_b = max(8, _round_up(block_b, 8))
    if B < 8:
        tb = B                       # full-array block (allowed by Mosaic)
    elif B <= block_b:
        tb = B if B % 8 == 0 else (B // 8) * 8   # partial last block if needed
    else:
        tb = block_b
    if B > 256:
        # Guarantee at least 2 grid steps so the "parallel" batch axis can
        # shard across v7x's two TensorCores (no effect on v5e/v6e).
        tb = min(tb, _round_up((B + 1) // 2, 8))
    return max(tb, 1)


def document_encoder_forward(x, w1_bf, w2_bf, packed, *,
                             block_b: int = 1024,
                             out_dtype=jnp.float32):
    """x: (B, E) f32 sentence embeddings. Returns (B, H) projections."""
    B, E = x.shape
    H = w1_bf.shape[1]
    TB = _choose_tb(B, block_b)
    grid = (pl.cdiv(B, TB),)

    # VMEM budget from the actual footprint (double-buffered tiles + f32
    # intermediates), capped with headroom under v7x's 64 MiB physical VMEM.
    out_bytes = jnp.dtype(out_dtype).itemsize
    footprint = (2 * TB * E * 4                # x tile (f32), double-buffered
                 + 2 * (E * H + H * H) * 2     # bf16 weights (budget 2 bufs)
                 + 2 * 4 * H * 4               # packed params
                 + 2 * TB * H * out_bytes      # output tile, double-buffered
                 + 8 * TB * H * 4)             # f32 intermediates (h, y, ...)
    vmem_limit = min(max(footprint + (4 << 20), 16 << 20), 56 << 20)

    return pl.pallas_call(
        _encoder_kernel,
        out_shape=jax.ShapeDtypeStruct((B, H), out_dtype),
        grid_spec=pltpu.PrefetchScalarGridSpec(
            num_scalar_prefetch=0,
            grid=grid,
            in_specs=[
                pl.BlockSpec((TB, E), lambda i: (i, 0)),  # x: tiled over batch
                pl.BlockSpec((E, H), lambda i: (0, 0)),   # W1: VMEM-resident
                pl.BlockSpec((H, H), lambda i: (0, 0)),   # W2: VMEM-resident
                pl.BlockSpec((4, H), lambda i: (0, 0)),   # [b1,b2,gamma,beta]
            ],
            out_specs=pl.BlockSpec((TB, H), lambda i: (i, 0)),
        ),
        compiler_params=pltpu.CompilerParams(
            dimension_semantics=("parallel",),  # megacore-shardable batch axis
            vmem_limit_bytes=int(vmem_limit),
        ),
    )(x, w1_bf, w2_bf, packed)


def _init_params(key, emb_dim, hidden_dim):
    """Deterministic init mirroring nn.Linear default (uniform +-1/sqrt(fan_in))."""
    k1, k2, k3, k4 = jax.random.split(key, 4)
    bound1 = 1.0 / jnp.sqrt(emb_dim)
    bound2 = 1.0 / jnp.sqrt(hidden_dim)
    w1 = jax.random.uniform(k1, (emb_dim, hidden_dim), jnp.float32, -bound1, bound1)
    b1 = jax.random.uniform(k2, (hidden_dim,), jnp.float32, -bound1, bound1)
    w2 = jax.random.uniform(k3, (hidden_dim, hidden_dim), jnp.float32, -bound2, bound2)
    b2 = jax.random.uniform(k4, (hidden_dim,), jnp.float32, -bound2, bound2)
    gamma = jnp.ones((hidden_dim,), jnp.float32)   # LayerNorm weight
    beta = jnp.zeros((hidden_dim,), jnp.float32)   # LayerNorm bias
    return w1, b1, w2, b2, gamma, beta


def _reference(x, w1, b1, w2, b2, gamma, beta, *, matmul_dtype=jnp.float32):
    """Pure-JAX reference; matmul operands cast to matmul_dtype, f32 accumulation."""
    def mm(a, b):
        return jnp.dot(a.astype(matmul_dtype), b.astype(matmul_dtype),
                       preferred_element_type=jnp.float32)
    h = jnp.maximum(mm(x, w1) + b1, 0.0)
    y = mm(h, w2) + b2
    mean = jnp.mean(y, axis=-1, keepdims=True)
    var = jnp.mean((y - mean) ** 2, axis=-1, keepdims=True)
    return (y - mean) / jnp.sqrt(var + LN_EPS) * gamma + beta


if __name__ == "__main__":
    # Shapes consistent with the module: all-MiniLM-L6-v2 embedding dim = 384,
    # hidden_dim = 384; small, non-multiple-of-8 batch to exercise the
    # partial-last-block path (no wrapper-side pad/slice anymore).
    batch, emb_dim, hidden_dim = 13, 384, 384

    key = jax.random.PRNGKey(0)
    k_x, k_p = jax.random.split(key)
    x = jax.random.normal(k_x, (batch, emb_dim), jnp.float32)
    params = _init_params(k_p, emb_dim, hidden_dim)
    prepped = prepare_encoder_params(*params)   # one-time bf16 / packing

    # References: bf16 matmul operands (what the kernel computes) and full f32.
    ref_bf16 = _reference(x, *params, matmul_dtype=jnp.bfloat16)
    ref_f32 = _reference(x, *params, matmul_dtype=jnp.float32)

    # 1) Small batch tile -> multi-step grid + masked partial last block.
    out = document_encoder_forward(x, *prepped, block_b=8)
    out = jax.block_until_ready(out)
    assert out.shape == (batch, hidden_dim)
    assert out.dtype == jnp.float32
    assert jnp.allclose(out, ref_bf16, atol=1e-2, rtol=1e-2), "mismatch vs bf16 reference"
    assert jnp.max(jnp.abs(out - ref_f32)) < 0.1, "bf16 path drifted from f32 reference"

    # 2) Default (large) batch tile -> single-step grid path.
    out2 = jax.block_until_ready(document_encoder_forward(x, *prepped))
    assert jnp.allclose(out2, ref_bf16, atol=1e-2, rtol=1e-2), "mismatch (default tile)"

    # 3) bf16 output path (halves the dominant HBM write stream).
    out3 = jax.block_until_ready(
        document_encoder_forward(x, *prepped, out_dtype=jnp.bfloat16))
    assert out3.dtype == jnp.bfloat16
    assert jnp.max(jnp.abs(out3.astype(jnp.float32) - ref_bf16)) < 5e-2, "mismatch (bf16 out)"

    print("KERNEL_OK")
</pallas_src>

<mosaic_0001>
module attributes {stable_mosaic.version = 11 : i64} {
  func.func @_encoder_kernel(%arg0: i32, %arg1: memref<8x384xf32, #tpu.memory_space<vmem>>, %arg2: memref<384x384xbf16, #tpu.memory_space<vmem>>, %arg3: memref<384x384xbf16, #tpu.memory_space<vmem>>, %arg4: memref<4x384xf32, #tpu.memory_space<vmem>>, %arg5: memref<8x384xf32, #tpu.memory_space<vmem>>) attributes {dimension_semantics = [#tpu.dimension_semantics<parallel>], iteration_bounds = array<i64: 2>, scalar_prefetch = 0 : i64, scratch_operands = 0 : i64, tpu.core_type = #tpu.core_type<tc>, window_params = [{transform_indices = @transform_0, window_bounds = array<i64: 8, 384>}, {pipeline_mode = #tpu.pipeline_mode<synchronous>, transform_indices = @transform_1, window_bounds = array<i64: 384, 384>}, {pipeline_mode = #tpu.pipeline_mode<synchronous>, transform_indices = @transform_2, window_bounds = array<i64: 384, 384>}, {pipeline_mode = #tpu.pipeline_mode<synchronous>, transform_indices = @transform_3, window_bounds = array<i64: 4, 384>}, {transform_indices = @transform_4, window_bounds = array<i64: 8, 384>}]} {
    %c0 = arith.constant 0 : index
    %c0_0 = arith.constant 0 : index
    %0 = vector.load %arg1[%c0, %c0_0] : memref<8x384xf32, #tpu.memory_space<vmem>>, vector<8x384xf32>
    %1 = arith.truncf %0 : vector<8x384xf32> to vector<8x384xbf16>
    %c0_1 = arith.constant 0 : index
    %c0_2 = arith.constant 0 : index
    %2 = vector.load %arg2[%c0_1, %c0_2] : memref<384x384xbf16, #tpu.memory_space<vmem>>, vector<384x384xbf16>
    %c0_3 = arith.constant 0 : index
    %c0_4 = arith.constant 0 : index
    %3 = vector.load %arg3[%c0_3, %c0_4] : memref<384x384xbf16, #tpu.memory_space<vmem>>, vector<384x384xbf16>
    %c0_5 = arith.constant 0 : index
    %c0_6 = arith.constant 0 : index
    %4 = vector.load %arg4[%c0_5, %c0_6] : memref<4x384xf32, #tpu.memory_space<vmem>>, vector<4x384xf32>
    %5 = vector.extract_strided_slice %4 {offsets = [0, 0], sizes = [1, 384], strides = [1, 1]} : vector<4x384xf32> to vector<1x384xf32>
    %6 = vector.extract_strided_slice %4 {offsets = [1, 0], sizes = [1, 384], strides = [1, 1]} : vector<4x384xf32> to vector<1x384xf32>
    %7 = vector.extract_strided_slice %4 {offsets = [2, 0], sizes = [1, 384], strides = [1, 1]} : vector<4x384xf32> to vector<1x384xf32>
    %8 = vector.extract_strided_slice %4 {offsets = [3, 0], sizes = [1, 384], strides = [1, 1]} : vector<4x384xf32> to vector<1x384xf32>
    %cst = arith.constant dense<0.000000e+00> : vector<8x384xf32>
    %9 = tpu.matmul %1, %2, %cst {dimension_numbers = #tpu.dot_dimension_numbers<[1], [0], [0], [1], [0, 0, 1, 1], [], []>} : vector<8x384xbf16>, vector<384x384xbf16>, vector<8x384xf32> -> vector<8x384xf32>
    %10 = vector.broadcast %5 : vector<1x384xf32> to vector<8x384xf32>
    %11 = arith.addf %9, %10 : vector<8x384xf32>
    %cst_7 = arith.constant 0.000000e+00 : f32
    %12 = vector.broadcast %cst_7 : f32 to vector<8x384xf32>
    %13 = arith.maximumf %11, %12 : vector<8x384xf32>
    %14 = arith.truncf %13 : vector<8x384xf32> to vector<8x384xbf16>
    %cst_8 = arith.constant dense<0.000000e+00> : vector<8x384xf32>
    %15 = tpu.matmul %14, %3, %cst_8 {dimension_numbers = #tpu.dot_dimension_numbers<[1], [0], [0], [1], [0, 0, 1, 1], [], []>} : vector<8x384xbf16>, vector<384x384xbf16>, vector<8x384xf32> -> vector<8x384xf32>
    %16 = vector.broadcast %6 : vector<1x384xf32> to vector<8x384xf32>
    %17 = arith.addf %15, %16 : vector<8x384xf32>
    %cst_9 = arith.constant dense<0.000000e+00> : vector<8xf32>
    %18 = vector.multi_reduction <add>, %17, %cst_9 [1] : vector<8x384xf32> to vector<8xf32>
    %19 = vector.shape_cast %18 : vector<8xf32> to vector<8x1xf32>
    %cst_10 = arith.constant 3.840000e+02 : f32
    %20 = vector.broadcast %cst_10 : f32 to vector<8x1xf32>
    %21 = arith.divf %19, %20 : vector<8x1xf32>
    %22 = vector.broadcast %21 : vector<8x1xf32> to vector<8x384xf32>
    %23 = arith.subf %17, %22 : vector<8x384xf32>
    %24 = arith.mulf %23, %23 : vector<8x384xf32>
    %cst_11 = arith.constant dense<0.000000e+00> : vector<8xf32>
    %25 = vector.multi_reduction <add>, %24, %cst_11 [1] : vector<8x384xf32> to vector<8xf32>
    %26 = vector.shape_cast %25 : vector<8xf32> to vector<8x1xf32>
    %cst_12 = arith.constant 3.840000e+02 : f32
    %27 = vector.broadcast %cst_12 : f32 to vector<8x1xf32>
    %28 = arith.divf %26, %27 : vector<8x1xf32>
    %cst_13 = arith.constant 9.99999974E-6 : f32
    %29 = vector.broadcast %cst_13 : f32 to vector<8x1xf32>
    %30 = arith.addf %28, %29 : vector<8x1xf32>
    %31 = math.rsqrt %30 : vector<8x1xf32>
    %32 = vector.broadcast %31 : vector<8x1xf32> to vector<8x384xf32>
    %33 = arith.mulf %23, %32 : vector<8x384xf32>
    %34 = vector.broadcast %7 : vector<1x384xf32> to vector<8x384xf32>
    %35 = arith.mulf %33, %34 : vector<8x384xf32>
    %36 = vector.broadcast %8 : vector<1x384xf32> to vector<8x384xf32>
    %37 = arith.addf %35, %36 : vector<8x384xf32>
    %c0_14 = arith.constant 0 : index
    %c0_15 = arith.constant 0 : index
    %38 = vector.load %arg5[%c0_14, %c0_15] : memref<8x384xf32, #tpu.memory_space<vmem>>, vector<8x384xf32>
    tpu.vector_store %arg5[%c0_14, %c0_15], %37 {strides = array<i32>} : memref<8x384xf32, #tpu.memory_space<vmem>>, vector<8x384xf32>,
    return
  }
  func.func @transform_0(%arg0: i32) -> (i32, i32) {
    %c0_i32 = arith.constant 0 : i32
    %c0_i32_0 = arith.constant 0 : i32
    return %arg0, %c0_i32 : i32, i32
  }
  func.func @transform_1(%arg0: i32) -> (i32, i32) {
    %c0_i32 = arith.constant 0 : i32
    %c0_i32_0 = arith.constant 0 : i32
    %c0_i32_1 = arith.constant 0 : i32
    return %c0_i32, %c0_i32_0 : i32, i32
  }
  func.func @transform_2(%arg0: i32) -> (i32, i32) {
    %c0_i32 = arith.constant 0 : i32
    %c0_i32_0 = arith.constant 0 : i32
    %c0_i32_1 = arith.constant 0 : i32
    return %c0_i32, %c0_i32_0 : i32, i32
  }
  func.func @transform_3(%arg0: i32) -> (i32, i32) {
    %c0_i32 = arith.constant 0 : i32
    %c0_i32_0 = arith.constant 0 : i32
    %c0_i32_1 = arith.constant 0 : i32
    return %c0_i32, %c0_i32_0 : i32, i32
  }
  func.func @transform_4(%arg0: i32) -> (i32, i32) {
    %c0_i32 = arith.constant 0 : i32
    %c0_i32_0 = arith.constant 0 : i32
    return %arg0, %c0_i32 : i32, i32
  }
}

</mosaic_0001>

<bundles_post_ra>
// kernel: tpu_custom_call.1
= control target key start
LH: loop header
LB: loop body
LE: loop exit
PB: predicated region body
PF: predicated region fallthrough
CT: control target
= control target key end

     0   :  { %9 = vsyncpa [#allocation3], 0  ;;  %s2819_s0 = inlined_call_operand.hbm [shape: f32[13,384], index: 0, kind: input, shape index: {}]   ;;  %s2820_s1 = inlined_call_operand.hbm [shape: bf16[384,384], index: 1, kind: input, shape index: {}]   ;;  %s2821_s2 = inlined_call_operand.hbm [shape: bf16[384,384], index: 2, kind: input, shape index: {}]   ;;  %s2822_s3 = inlined_call_operand.hbm [shape: f32[4,384], index: 3, kind: input, shape index: {}]   ;;  %s2823_s4 = inlined_call_operand.hbm [shape: f32[13,384], index: 4, kind: output, shape index: {}]  }
   0x1   :  { %11 = vsyncpa [#allocation3 + $0x1], 0 }
   0x2   :  { %12 = vsyncpa [#allocation6], 0 }
   0x3   :  { %13 = vsyncpa [#allocation9], 0 }
   0x4   :  { %14 = vsyncpa [#allocation4], 0 }
   0x5   :  { %16 = vsyncpa [#allocation4 + $0x1], 0  ;;  %s2565_s15 = smov 0   ;;  %s2567_s16 = smov 0  }
   0x6   :  { %s2569_s17 = smov 0   ;;  %s2571_s18 = smov 0  }
   0x7 LB: > { %s2586_s19 = sadd.s32 4294967295, %s2528_s18   ;;  %s1810_s20 = sadd.s32 4294967294, %s2528_s18   ;;  %s2528_s18 = sphi %s2571_s18, %s2847_s18   ;;  %s2524_s17 = sphi %s2569_s17, %s2846_s17   ;;  %s2520_s16 = sphi %s2567_s16, %s2845_s16   ;;  %s2516_s15 = sphi %s2565_s15, %s2844_s15  }
   0x8   : > { %p42_p0 = scmp.ne.s32.totalorder %s2520_s16, %s2516_s15  ;;  %p2824_p1 = scmp.eq.s32.totalorder %s2586_s19, 0 }
   0x9   : > { %p135_p3 = scmp.eq.s32.totalorder %s1810_s20, 1  ;;  %p1811_p5 = scmp.ge.s32.totalorder %s2528_s18, 1 }
   0xa   : > { %p2595_p4 = por %p2824_p1, %p42_p0  ;;  %p142_p7 = scmp.lt.s32.totalorder %s2528_s18, 3 }
   0xb   : > { %p2600_p6 = por %p135_p3, %p42_p0  ;;  %s2530_s24 = smov [#allocation5]  }
   0xc   : > { %s2828_s21 = scalar_select %p2595_p4, 1, 0 }
   0xd   : > { %s2829_s22 = scalar_select %p2600_p6, 1, 0 }
   0xe   : > { %p2605_p8 = pnand %p1811_p5, %p142_p7  ;;  %s154_s25 = sshll.u32 %s2530_s24, 4  ;;  %s155_s25 = int_to_ptr.vmem [resolvable:$true] %s154_s25 }
   0xf   : > { %s2531_s27 = smov [#allocation7]   ;;  %s2532_s29 = smov [#allocation8]  }
  0x10   : > { %s2830_s23 = scalar_select %p2605_p8, 1, 0 }
  0x11   : > { %p2090_p9 = pneg %p2605_p8  ;;  %s167_s28 = sshll.u32 %s2531_s27, 4  ;;  %s168_s28 = int_to_ptr.vmem [resolvable:$true] %s167_s28 }
  0x12   : > { %s181_s30 = sshll.u32 %s2532_s29, 4  ;;  %s2361_s5 = scalar_lea.vmem %s155_s25, 9216  ;;  %s182_s30 = int_to_ptr.vmem [resolvable:$true] %s181_s30 }
  0x13   : > { %p2614_p11 = pnand %p2090_p9, %p2824_p1  ;;  %p2362_p13 = scmp.ne.s32.totalorder %s155_s25, %s2361_s5 }
  0x14   : > { %p2369_p5 = scmp.lt.s32.totalorder %s155_s25, %s155_s25  ;;  %p2370_p7 = scmp.lt.s32.totalorder %s2361_s5, %s2361_s5 }
  0x15   : > { %p2352_p12 = pneg %p2614_p11 }
  0x16   : > { %p2371_p9 = por %p2370_p7, %p2369_p5 }
  0x17   : > { %p2364_p0 = pnand %p2362_p13, %p2352_p12 }
  0x19   : > { %p2365_p3 = pneg %p2364_p0 }
  0x1b   : > { %p2372_p10 = pnand %p2371_p9, %p2365_p3 }
  0x1d   : > { %2375 = shalt.err (!%p2372_p10)
}
  0x1e   : > { %s2533_s6 = smov 192   ;;  %s2534_s7 = smov 12  }
  0x1f   : > { %2093 = dma.hbm_to_vmem [thread:$0]  (!%p2614_p11), %s2820_s1, 9216, %s155_s25, [#allocation6], %s2533_s6, %s2533_s6, %s2534_s7  }
  0x20   : > { %s2387_s10 = scalar_lea.vmem %s168_s28, 9216  ;;  %p2395_p2 = scmp.lt.s32.totalorder %s168_s28, %s168_s28 }
  0x21   : > { %p2388_p1 = scmp.ne.s32.totalorder %s168_s28, %s2387_s10  ;;  %p2396_p6 = scmp.lt.s32.totalorder %s2387_s10, %s2387_s10 }
  0x23   : > { %p2390_p13 = pnand %p2388_p1, %p2352_p12  ;;  %p2397_p5 = por %p2396_p6, %p2395_p2 }
  0x25   : > { %p2391_p0 = pneg %p2390_p13 }
  0x27   : > { %p2398_p3 = pnand %p2397_p5, %p2391_p0 }
  0x29   : > { %2401 = shalt.err (!%p2398_p3)
}
  0x2a   : > { %2096 = dma.hbm_to_vmem [thread:$0]  (!%p2614_p11), %s2821_s2, 9216, %s168_s28, [#allocation6], %s2533_s6, %s2533_s6, %s2534_s7  }
  0x2b   : > { %s2413_s13 = scalar_lea.vmem %s182_s30, 192  ;;  %p2421_p9 = scmp.lt.s32.totalorder %s182_s30, %s182_s30 }
  0x2c   : > { %p2414_p10 = scmp.ne.s32.totalorder %s182_s30, %s2413_s13  ;;  %p2422_p13 = scmp.lt.s32.totalorder %s2413_s13, %s2413_s13 }
  0x2e   : > { %p2416_p7 = pnand %p2414_p10, %p2352_p12  ;;  %p2423_p4 = por %p2422_p13, %p2421_p9 }
  0x30   : > { %p2417_p1 = pneg %p2416_p7 }
  0x32   : > { %p2424_p2 = pnand %p2423_p4, %p2417_p1 }
  0x34   : > { %2427 = shalt.err (!%p2424_p2)
}
  0x35   : > { %2099 = dma.hbm_to_vmem [thread:$0]  (!%p2614_p11), %s2822_s3, 192, %s182_s30, [#allocation9]  }
  0x36   : > { %s2645_s24 = sadd.s32 1, %s2528_s18   ;;  %s29_s26 = sadd.s32 1, %s2524_s17 }
  0x37   : > { %s26_s25 = ssub.s32 %s2528_s18, %s2645_s24  ;;  %p36_p6 = scmp.ne.s32.totalorder %s2524_s17, %s2520_s16 }
  0x38   : > { %p27_p4 = scmp.eq.s32.totalorder %s26_s25, 0  ;;  %p37_p12 = scmp.eq.s32.totalorder %s2528_s18, 0 }
  0x39   : > { %p2111_p0 = scmp.lt.s32.totalorder %s2528_s18, 2  ;;  %p2832_p3 = scmp.eq.s32.totalorder %s2586_s19, 1 }
  0x3a   : > { %s2655_s27 = scalar_select %p27_p4, %s2524_s17, %s29_s26  }
  0x3b   : > { %p38_p5 = por %p37_p12, %p36_p6  ;;  %p2659_p10 = por %p2832_p3, %p36_p6 }
  0x3c   : > { %s192_s29 = sand.u32 1, %s2524_s17   ;;  %s2071_s5 = smul.u32 384, %s2528_s18 }
  0x3d   : > { %s2833_s28 = scalar_select %p2659_p10, 1, 0 }
  0x3e   : > { %s2070_s30 = smul.u32 24, %s192_s29  ;;  %p2665_p11 = pnand %p2111_p0, %p38_p5 }
  0x3f   : > { %s2672_s9 = scalar_lea.hbm %s2819_s0, %s2071_s5  ;;  %s193_s12 = scalar_lea.sflag [#allocation3], %s192_s29 }
  0x40   : > { %s196_s10 = scalar_lea.vmem [#allocation2], %s2070_s30  ;;  %s2428_s13 = scalar_lea.hbm %s2672_s9, 384 }
  0x41   : > { %s204_s11 = sshll.u32 %s196_s10, 4  ;;  %p2429_p7 = scmp.ne.s32.totalorder %s2672_s9, %s2428_s13  ;;  %s205_s11 = int_to_ptr.vmem [resolvable:$true] %s204_s11 }
  0x42   : > { %p2430_p1 = pneg %p2665_p11  ;;  %s2433_s25 = scalar_lea.hbm %s2819_s0, 768 }
  0x43   : > { %p2434_p2 = scmp.lt.s32.totalorder %s2672_s9, %s2819_s0  ;;  %p2435_p4 = scmp.lt.s32.totalorder %s2433_s25, %s2428_s13 }
  0x44   : > { %p2431_p9 = pnand %p2430_p1, %p2429_p7 }
  0x45   : > { %p2436_p6 = por %p2435_p4, %p2434_p2 }
  0x46   : > { %p2432_p13 = pneg %p2431_p9 }
  0x48   : > { %p2437_p12 = pnand %p2436_p6, %p2432_p13 }
  0x4a   : > { %2440 = shalt.err (!%p2437_p12)
}
  0x4b   : > { %s2441_s30 = scalar_lea.vmem %s205_s11, 384  ;;  %s2535_s29 = smov [#allocation2]  }
  0x4c   : > { %p2442_p0 = scmp.ne.s32.totalorder %s205_s11, %s2441_s30  ;;  %s2446_s7 = sshll.u32 %s2535_s29, 4  ;;  %s2447_s7 = int_to_ptr.vmem [resolvable:$false] %s2446_s7 }
  0x4d   : > { %s2448_s8 = scalar_lea.vmem %s2447_s7, 768  ;;  %p2449_p7 = scmp.lt.s32.totalorder %s205_s11, %s2447_s7 }
  0x4e   : > { %p2444_p5 = pnand %p2442_p0, %p2430_p1  ;;  %p2450_p9 = scmp.lt.s32.totalorder %s2448_s8, %s2441_s30 }
  0x50   : > { %p2445_p3 = pneg %p2444_p5  ;;  %p2451_p10 = por %p2450_p9, %p2449_p7 }
  0x52   : > { %p2452_p8 = pnand %p2451_p10, %p2445_p3 }
  0x54   : > { %2455 = shalt.err (!%p2452_p8)
}
  0x55   : > { %2103 = dma.hbm_to_vmem [thread:$0]  (!%p2665_p11), %s2672_s9, 384, %s205_s11, %s193_s12  }
  0x56   : > { %p2835_p13 = scmp.ne.s32.totalorder %s2830_s23, 0 }
  0x57   : > { %s2691_s10 = sand.u32 (!%p2835_p13), 1, %s2520_s16   ;;  %p2836_p8 = scmp.ne.s32.totalorder (!%p2835_p13), %s2828_s21, 0 }
  0x58   : > { %213 = sbr.rel (%p2835_p13) target bundleno = 955 (0x3bb), region = 36  ;;  %s216_s14 = scalar_lea.sflag (!%p2835_p13), [#allocation3], %s2691_s10 }
  0x59   : > { %s2072_s13 = smul.u32 (!%p2835_p13), 24, %s2691_s10 }
  0x5b   : > { %s2697_s20 = scalar_lea.vmem (!%p2835_p13), [#allocation2], %s2072_s13 }
  0x5d   : > { %2499 = dma.done.wait (%p2836_p8), %s216_s14, 384  }
  0x5e   : > { %2501 = vsyncadd (%p2836_p8), %s216_s14, 4294966912  ;;  %p2837_p10 = scmp.eq.s32.totalorder %s2586_s19, 0 }
  0x60   : > { %2503 = dma.done.wait (%p2837_p10), [#allocation6], 18432   ;;  %p2838_p11 = pmov %p2837_p10 }
  0x61   : > { %p2839_p1 = pmov %p2837_p10 }
  0x62   : > { %2505 = vsyncadd (%p2838_p11), [#allocation6], 4294948864 }
  0x63   : > { %2507 = dma.done.wait (%p2839_p1), [#allocation9], 192   ;;  %p2840_p2 = pmov %p2839_p1 }
  0x64   : > { %v2536_v0 = vmov 0   ;;  %v2156_v1 = vld [vmem:[#allocation5 + $0xac] ss:$12 sps:$4 sm:$0xff]   ;;  %v2158_v2 = vld [vmem:[#allocation5 + $0xa8] ss:$12 sps:$4 sm:$0xff]   ;;  %vm2538_vm0 = vmmov 0  }
  0x65   : > { %2509 = vsyncadd (%p2840_p2), [#allocation9], 4294967104  ;;  %943 = vmatprep.mubr.bf16.mxu1 %v2536_v0  ;;  %870 = vmatprep.subr.bf16.mxu0 %v2156_v1  ;;  %v2159_v3 = vld [vmem:[#allocation5 + $0x94] ss:$12 sps:$4 sm:$0xff]   ;;  %v2161_v4 = vld [vmem:[#allocation5 + $0x90] ss:$12 sps:$4 sm:$0xff]  }
  0x66   : > { %871 = vmatpush1.bf16.msra.mxu0 %v2158_v2  ;;  %v2162_v5 = vld [vmem:[#allocation5 + $0x7c] ss:$12 sps:$4 sm:$0xff]   ;;  %v2164_v6 = vld [vmem:[#allocation5 + $0x78] ss:$12 sps:$4 sm:$0xff]   ;;  %v2167_v10 = vld [vmem:[#allocation5 + $0x60] ss:$12 sps:$4 sm:$0xff]  }
  0x67   : > { %872 = vmatprep.subr.bf16.mxu0 %v2159_v3  ;;  %v2165_v7 = vld [vmem:[#allocation5 + $0x64] ss:$12 sps:$4 sm:$0xff]   ;;  %v2173_v8 = vld [vmem:[#allocation5 + $0x22c] ss:$12 sps:$4 sm:$0xff]   ;;  %v2176_v9 = vld [vmem:[#allocation5 + $0x228] ss:$12 sps:$4 sm:$0xff]  }
  0x68   : > { %911 = vmatprep.subr.bf16.mxu1 %v2173_v8  ;;  %v2179_v11 = vld [vmem:[#allocation5 + $0x214] ss:$12 sps:$4 sm:$0xff]   ;;  %v2182_v12 = vld [vmem:[#allocation5 + $0x210] ss:$12 sps:$4 sm:$0xff]   ;;  %v2168_v13 = vld [vmem:[#allocation5 + $0x4c] ss:$12 sps:$4 sm:$0xff]  }
  0x69   : > { %912 = vmatpush1.bf16.msra.mxu1 %v2176_v9  ;;  %v2185_v14 = vld [vmem:[#allocation5 + $0x1fc] ss:$12 sps:$4 sm:$0xff]   ;;  %v2188_v16 = vld [vmem:[#allocation5 + $0x1f8] ss:$12 sps:$4 sm:$0xff]   ;;  %v2171_v17 = vld [vmem:[#allocation5 + $0x34] ss:$12 sps:$4 sm:$0xff]  }
  0x6a   : > { %873 = vmatpush1.bf16.msra.mxu0 %v2161_v4  ;;  %913 = vmatprep.subr.bf16.mxu1 %v2179_v11  ;;  %v2170_v15 = vld [vmem:[#allocation5 + $0x48] ss:$12 sps:$4 sm:$0xff]   ;;  %v2191_v18 = vld [vmem:[#allocation5 + $0x1e4] ss:$12 sps:$4 sm:$0xff]   ;;  %v2194_v21 = vld [vmem:[#allocation5 + $0x1e0] ss:$12 sps:$4 sm:$0xff]  }
  0x6b   : > { %874 = vmatprep.subr.bf16.mxu0 %v2162_v5  ;;  %v2175_v19 = vld [vmem:[#allocation5 + $0x30] ss:$12 sps:$4 sm:$0xff]   ;;  %v2197_v22 = vld [vmem:[#allocation5 + $0x1cc] ss:$12 sps:$4 sm:$0xff]   ;;  %v2200_v24 = vld [vmem:[#allocation5 + $0x1c8] ss:$12 sps:$4 sm:$0xff]  }
  0x6c   : > { %v2177_v20 = vld [vmem:[#allocation5 + $0x1c] ss:$12 sps:$4 sm:$0xff]   ;;  %v2181_v23 = vld [vmem:[#allocation5 + $0x18] ss:$12 sps:$4 sm:$0xff]   ;;  %v2203_v26 = vld [vmem:[#allocation5 + $0x1b4] ss:$12 sps:$4 sm:$0xff]  }
  0x6d   : > { %914 = vmatpush1.bf16.msra.mxu1 %v2182_v12  ;;  %v2183_v25 = vld [vmem:[#allocation5 + $0x4] ss:$12 sps:$4 sm:$0xff]   ;;  %v2187_v27 = vld [vmem:[#allocation5] ss:$12 sps:$4 sm:$0xff]   ;;  %v2209_v30 = vld [vmem:[#allocation5 + $0x19c] ss:$12 sps:$4 sm:$0xff]  }
  0x6e   : > { %875 = vmatpush1.bf16.msra.mxu0 %v2164_v6  ;;  %915 = vmatprep.subr.bf16.mxu1 %v2185_v14  ;;  %v2189_v28 = vld [vmem:[#allocation5 + $0x16c] ss:$12 sps:$4 sm:$0xff]   ;;  %v2206_v29 = vld [vmem:[#allocation5 + $0x1b0] ss:$12 sps:$4 sm:$0xff]   ;;  %v2193_v31 = vld [vmem:[#allocation5 + $0x168] ss:$12 sps:$4 sm:$0xff]  }
  0x6f   : > { %876 = vmatprep.subr.bf16.mxu0 %v2165_v7  ;;  %v2195_v32 = vld [vmem:[#allocation5 + $0x154] ss:$12 sps:$4 sm:$0xff]   ;;  %v2212_v33 = vld [vmem:[#allocation5 + $0x198] ss:$12 sps:$4 sm:$0xff]   ;;  %v2199_v35 = vld [vmem:[#allocation5 + $0x150] ss:$12 sps:$4 sm:$0xff]  }
  0x70   : > { %v2215_v34 = vld [vmem:[#allocation5 + $0x184] ss:$12 sps:$4 sm:$0xff]   ;;  %v2201_v36 = vld [vmem:[#allocation5 + $0x13c] ss:$12 sps:$4 sm:$0xff]   ;;  %v2218_v37 = vld [vmem:[#allocation5 + $0x180] ss:$12 sps:$4 sm:$0xff]  }
  0x71   : > { %916 = vmatpush1.bf16.msra.mxu1 %v2188_v16  ;;  %v259_v38 = vld [vmem:[%s2697_s20 + $0x10] sm:$0xff]  ;;  %v258_v43 = vld [vmem:[%s2697_s20 + $0x8] sm:$0xff]  ;;  %v257_v1 = vld [vmem:[%s2697_s20] sm:$0xff]  ;;  %v2537_v7 = vmov 0.0   ;;  %s2073_s21 = smul.u32 384, %s2586_s19  ;;  %s255_s23 = scalar_lea.vmem [#allocation10], %s2072_s13 }
  0x72   : > { %877 = vmatpush1.bf16.msra.mxu0 %v2167_v10  ;;  %917 = vmatprep.subr.bf16.mxu1 %v2191_v18  ;;  %v2221_v39 = vld [vmem:[#allocation5 + $0x170] ss:$12 sps:$4 sm:$0xff]   ;;  %v2205_v40 = vld [vmem:[#allocation5 + $0x138] ss:$12 sps:$4 sm:$0xff]   ;;  %v2713_v42 = vpack.c.bf16 %v259_v38, %v259_v38  ;;  %v261_v45 = vpack.c.bf16 %v258_v43, %v258_v43  ;;  %v2211_v47 = vld [vmem:[#allocation5 + $0x120] ss:$12 sps:$4 sm:$0xff]   ;;  %v260_v4 = vpack.c.bf16 %v257_v1, %v257_v1 }
  0x73   : > { %878 = vmatprep.subr.bf16.mxu0 %v2168_v13  ;;  %v2207_v41 = vld [vmem:[#allocation5 + $0x124] ss:$12 sps:$4 sm:$0xff]   ;;  %v2213_v48 = vld [vmem:[#allocation5 + $0x10c] ss:$12 sps:$4 sm:$0xff]   ;;  %v2217_v51 = vld [vmem:[#allocation5 + $0x108] ss:$12 sps:$4 sm:$0xff]   ;;  %s2776_s12 = scalar_lea.hbm %s2823_s4, %s2073_s21 }
  0x74   : > { %v2223_v44 = vld [vmem:[#allocation5 + $0xb0] ss:$12 sps:$4 sm:$0xff]   ;;  %v2226_v46 = vld [vmem:[#allocation5 + $0x158] ss:$12 sps:$4 sm:$0xff]   ;;  %902 = vmatprep.mubr.bf16.mxu0 %v261_v45  ;;  %v2231_v50 = vld [vmem:[#allocation5 + $0x140] ss:$12 sps:$4 sm:$0xff]  }
  0x75   : > { %918 = vmatpush1.bf16.msra.mxu1 %v2194_v21  ;;  %v2228_v49 = vld [vmem:[#allocation5 + $0x98] ss:$12 sps:$4 sm:$0xff]   ;;  %v2219_v52 = vld [vmem:[#allocation5 + $0xf4] ss:$12 sps:$4 sm:$0xff]   ;;  %v2222_v55 = vld [vmem:[#allocation5 + $0xf0] ss:$12 sps:$4 sm:$0xff]  }
  0x76   : > { %879 = vmatpush1.bf16.msra.mxu0 %v2170_v15  ;;  %919 = vmatprep.subr.bf16.mxu1 %v2197_v22  ;;  %v2233_v53 = vld [vmem:[#allocation5 + $0x80] ss:$12 sps:$4 sm:$0xff]   ;;  %v2234_v54 = vld [vmem:[#allocation5 + $0x128] ss:$12 sps:$4 sm:$0xff]   ;;  %v2237_v58 = vld [vmem:[#allocation5 + $0x110] ss:$12 sps:$4 sm:$0xff]  }
  0x77   : > { %880 = vmatprep.subr.bf16.mxu0 %v2171_v17  ;;  %v2224_v56 = vld [vmem:[#allocation5 + $0xdc] ss:$12 sps:$4 sm:$0xff]   ;;  %v2227_v59 = vld [vmem:[#allocation5 + $0xd8] ss:$12 sps:$4 sm:$0xff]   ;;  %v2232_v63 = vld [vmem:[#allocation5 + $0xc0] ss:$12 sps:$4 sm:$0xff]  }
  0x78   : > { %v2235_v57 = vld [vmem:[#allocation5 + $0x68] ss:$12 sps:$4 sm:$0xff]   ;;  %v2229_v60 = vld [vmem:[#allocation5 + $0xc4] ss:$12 sps:$4 sm:$0xff]   ;;  %v2243_v3 = vld [vmem:[#allocation5 + $0xe0] ss:$12 sps:$4 sm:$0xff]  }
  0x79   : > { %920 = vmatpush1.bf16.msra.mxu1 %v2200_v24  ;;  %v2238_v61 = vld [vmem:[#allocation5 + $0x50] ss:$12 sps:$4 sm:$0xff]   ;;  %v2240_v62 = vld [vmem:[#allocation5 + $0xf8] ss:$12 sps:$4 sm:$0xff]   ;;  %v2244_v6 = vld [vmem:[#allocation5 + $0x20] ss:$12 sps:$4 sm:$0xff]  }
  0x7a   : > { %881 = vmatpush1.bf16.msra.mxu0 %v2175_v19  ;;  %921 = vmatprep.subr.bf16.mxu1 %v2203_v26  ;;  %v2241_v2 = vld [vmem:[#allocation5 + $0x38] ss:$12 sps:$4 sm:$0xff]   ;;  %v2236_v5 = vld [vmem:[#allocation5 + $0x230] ss:$12 sps:$4 sm:$0xff]   ;;  %v2246_v8 = vld [vmem:[#allocation5 + $0xc8] ss:$12 sps:$4 sm:$0xff]  }
  0x7b   : > { %882 = vmatprep.subr.bf16.mxu0 %v2177_v20  ;;  %v2239_v9 = vld [vmem:[#allocation5 + $0x218] ss:$12 sps:$4 sm:$0xff]   ;;  %v2247_v10 = vld [vmem:[#allocation5 + $0x8] ss:$12 sps:$4 sm:$0xff]   ;;  %v2242_v12 = vld [vmem:[#allocation5 + $0x200] ss:$12 sps:$4 sm:$0xff]  }
  0x7c   : > { %v2254_v11 = vld [vmem:[#allocation7 + $0xac] ss:$12 sps:$4 sm:$0xff]   ;;  %v2252_v13 = vld [vmem:[#allocation7 + $0xa8] ss:$12 sps:$4 sm:$0xff]   ;;  %v2255_v16 = vld [vmem:[#allocation7 + $0x90] ss:$12 sps:$4 sm:$0xff]  }
  0x7d   : > { %922 = vmatpush1.bf16.msra.mxu1 %v2206_v29  ;;  %v2257_v14 = vld [vmem:[#allocation7 + $0x94] ss:$12 sps:$4 sm:$0xff]   ;;  %v2260_v17 = vld [vmem:[#allocation7 + $0x7c] ss:$12 sps:$4 sm:$0xff]   ;;  %v2258_v19 = vld [vmem:[#allocation7 + $0x78] ss:$12 sps:$4 sm:$0xff]  }
  0x7e   : > { %883 = vmatpush1.bf16.msra.mxu0 %v2181_v23  ;;  %923 = vmatprep.subr.bf16.mxu1 %v2209_v30  ;;  %v2245_v15 = vld [vmem:[#allocation5 + $0x1e8] ss:$12 sps:$4 sm:$0xff]   ;;  %v2248_v18 = vld [vmem:[#allocation5 + $0x1d0] ss:$12 sps:$4 sm:$0xff]   ;;  %v2249_v21 = vld [vmem:[#allocation5 + $0x1b8] ss:$12 sps:$4 sm:$0xff]  }
  0x7f   : > { %884 = vmatprep.subr.bf16.mxu0 %v2183_v25  ;;  %v2263_v20 = vld [vmem:[#allocation7 + $0x64] ss:$12 sps:$4 sm:$0xff]   ;;  %v2261_v22 = vld [vmem:[#allocation7 + $0x60] ss:$12 sps:$4 sm:$0xff]   ;;  %v2264_v25 = vld [vmem:[#allocation7 + $0x48] ss:$12 sps:$4 sm:$0xff]  }
  0x80   : > { %v2266_v23 = vld [vmem:[#allocation7 + $0x4c] ss:$12 sps:$4 sm:$0xff]   ;;  %v2269_v26 = vld [vmem:[#allocation7 + $0x34] ss:$12 sps:$4 sm:$0xff]   ;;  %v2272_v29 = vld [vmem:[#allocation7 + $0x1c] ss:$12 sps:$4 sm:$0xff]  }
  0x81   : > { %924 = vmatpush1.bf16.msra.mxu1 %v2212_v33  ;;  %v2250_v24 = vld [vmem:[#allocation5 + $0x1a0] ss:$12 sps:$4 sm:$0xff]   ;;  %v2270_v30 = vld [vmem:[#allocation7 + $0x18] ss:$12 sps:$4 sm:$0xff]   ;;  %v2291_v43 = vld [vmem:[#allocation7 + $0xf0] ss:$12 sps:$4 sm:$0xff]  }
  0x82   : > { %885 = vmatpush1.bf16.msra.mxu0 %v2187_v27  ;;  %925 = vmatprep.subr.bf16.mxu1 %v2215_v34  ;;  %v2251_v27 = vld [vmem:[#allocation5 + $0x188] ss:$12 sps:$4 sm:$0xff]   ;;  %v2278_v33 = vld [vmem:[#allocation7 + $0x16c] ss:$12 sps:$4 sm:$0xff]   ;;  %v2331_v1 = vld [vmem:[#allocation7 + $0x170] ss:$12 sps:$4 sm:$0xff]  }
  0x83   : > { %886 = vmatprep.subr.bf16.mxu0 %v2189_v28  ;;  %v2267_v28 = vld [vmem:[#allocation7 + $0x30] ss:$12 sps:$4 sm:$0xff]   ;;  %v2276_v34 = vld [vmem:[#allocation7 + $0x168] ss:$12 sps:$4 sm:$0xff]   ;;  %v2282_v38 = vld [vmem:[#allocation7 + $0x138] ss:$12 sps:$4 sm:$0xff]  }
  0x84   : > { %s1711_s6 = sshll.u32 %s255_s23, 4  ;;  %s1697_s19 = scalar_lea.sflag [#allocation4], %s2691_s10  ;;  %s2778_s6 = int_to_ptr.vmem [resolvable:$true] %s1711_s6 }
  0x85   : > { %926 = vmatpush1.bf16.msra.mxu1 %v2218_v37  ;;  %v2284_v37 = vld [vmem:[#allocation7 + $0x13c] ss:$12 sps:$4 sm:$0xff]   ;;  %s2456_s25 = scalar_lea.vmem %s2778_s6, 384  ;;  %p2841_p6 = scmp.ne.s32.totalorder %s2833_s28, 0 }
  0x86   : > { %887 = vmatpush2.bf16.msra.mxu0 %v2193_v31  ;;  %1968 = vmatprep.subr.bf16.mxu1 %v2221_v39  ;;  %v2275_v31 = vld [vmem:[#allocation7 + $0x4] ss:$12 sps:$4 sm:$0xff]   ;;  %p2457_p4 = scmp.ne.s32.totalorder %s2778_s6, %s2456_s25  ;;  %s2539_s26 = smov [#allocation10]  }
  0x87   : > { %888 = vmatprep.subr.bf16.mxu0 %v2195_v32  ;;  %v2273_v32 = vld [vmem:[#allocation7] ss:$12 sps:$4 sm:$0xff]   ;;  %v2287_v39 = vld [vmem:[#allocation7 + $0x124] ss:$12 sps:$4 sm:$0xff]   ;;  %s2460_s5 = sshll.u32 %s2539_s26, 4  ;;  %s2461_s5 = int_to_ptr.vmem [resolvable:$false] %s2460_s5 }
  0x88   : > { %944 = vmatmul.mubr.bf16.vlgmr.msra.gmra.mxu1 %v2713_v42  ;;  %p2458_p12 = pnand %p2457_p4, %p2841_p6  ;;  %s2462_s30 = scalar_lea.vmem %s2461_s5, 768 }
  0x89   : > { %1969 = vmatpush3.bf16.msra.mxu1 %v2223_v44  ;;  %984 = vmatprep.mubr.bf16.mxu1 %v261_v45  ;;  %v2296_v44 = vld [vmem:[#allocation7 + $0xdc] ss:$12 sps:$4 sm:$0xff]   ;;  %v2294_v45 = vld [vmem:[#allocation7 + $0xd8] ss:$12 sps:$4 sm:$0xff]   ;;  %p2463_p5 = scmp.lt.s32.totalorder %s2778_s6, %s2461_s5  ;;  %p2464_p3 = scmp.lt.s32.totalorder %s2462_s30, %s2456_s25 }
  0x8a   : > { %889 = vmatpush2.bf16.msra.mxu0 %v2199_v35  ;;  %1970 = vmatprep.subr.bf16.mxu1 %v2226_v46  ;;  %v2281_v35 = vld [vmem:[#allocation7 + $0x154] ss:$12 sps:$4 sm:$0xff]   ;;  %v2299_v46 = vld [vmem:[#allocation7 + $0x22c] ss:$12 sps:$4 sm:$0xff]   ;;  %p2459_p0 = pneg %p2458_p12 }
  0x8b   : > { %890 = vmatprep.subr.bf16.mxu0 %v2201_v36  ;;  %v2279_v36 = vld [vmem:[#allocation7 + $0x150] ss:$12 sps:$4 sm:$0xff]   ;;  %p2465_p7 = por %p2464_p3, %p2463_p5 }
  0x8d   : > { %1971 = vmatpush3.bf16.msra.mxu1 %v2228_v49  ;;  %v2300_v49 = vld [vmem:[#allocation7 + $0xc0] ss:$12 sps:$4 sm:$0xff]   ;;  %p2466_p9 = pnand %p2465_p7, %p2459_p0 }
  0x8e   : > { %891 = vmatpush2.bf16.msra.mxu0 %v2205_v40  ;;  %1972 = vmatprep.subr.bf16.mxu1 %v2231_v50  ;;  %v2285_v40 = vld [vmem:[#allocation7 + $0x120] ss:$12 sps:$4 sm:$0xff]  }
  0x8f   : > { %892 = vmatprep.subr.bf16.mxu0 %v2207_v41  ;;  %v2290_v41 = vld [vmem:[#allocation7 + $0x10c] ss:$12 sps:$4 sm:$0xff]   ;;  %v2305_v50 = vld [vmem:[#allocation7 + $0x214] ss:$12 sps:$4 sm:$0xff]  }
  0x91   : > { %1973 = vmatpush3.bf16.msra.mxu1 %v2233_v53  ;;  %v2309_v53 = vld [vmem:[#allocation7 + $0x1fc] ss:$12 sps:$4 sm:$0xff]  }
  0x92   : > { %893 = vmatpush2.bf16.msra.mxu0 %v2211_v47  ;;  %1974 = vmatprep.subr.bf16.mxu1 %v2234_v54  ;;  %v2297_v47 = vld [vmem:[#allocation7 + $0x228] ss:$12 sps:$4 sm:$0xff]   ;;  %v2311_v54 = vld [vmem:[#allocation7 + $0x1e0] ss:$12 sps:$4 sm:$0xff]  }
  0x93   : > { %894 = vmatprep.subr.bf16.mxu0 %v2213_v48  ;;  %v2302_v48 = vld [vmem:[#allocation7 + $0xc4] ss:$12 sps:$4 sm:$0xff]  }
  0x95   : > { %1975 = vmatpush3.bf16.msra.mxu1 %v2235_v57  ;;  %v2317_v57 = vld [vmem:[#allocation7 + $0x1cc] ss:$12 sps:$4 sm:$0xff]  }
  0x96   : > { %895 = vmatpush2.bf16.msra.mxu0 %v2217_v51  ;;  %1976 = vmatprep.subr.bf16.mxu1 %v2237_v58  ;;  %v2303_v51 = vld [vmem:[#allocation7 + $0x210] ss:$12 sps:$4 sm:$0xff]  }
  0x97   : > { %896 = vmatprep.subr.bf16.mxu0 %v2219_v52  ;;  %v2307_v52 = vld [vmem:[#allocation7 + $0x1f8] ss:$12 sps:$4 sm:$0xff]   ;;  %v2319_v58 = vld [vmem:[#allocation7 + $0x1b0] ss:$12 sps:$4 sm:$0xff]  }
  0x99   : > { %1977 = vmatpush3.bf16.msra.mxu1 %v2238_v61  ;;  %v2325_v61 = vld [vmem:[#allocation7 + $0x19c] ss:$12 sps:$4 sm:$0xff]  }
  0x9a   : > { %897 = vmatpush2.bf16.msra.mxu0 %v2222_v55  ;;  %1978 = vmatprep.subr.bf16.mxu1 %v2240_v62  ;;  %v2313_v55 = vld [vmem:[#allocation7 + $0x1e4] ss:$12 sps:$4 sm:$0xff]  }
  0x9b   : > { %898 = vmatprep.subr.bf16.mxu0 %v2224_v56  ;;  %v2315_v56 = vld [vmem:[#allocation7 + $0x1c8] ss:$12 sps:$4 sm:$0xff]   ;;  %v2329_v62 = vld [vmem:[#allocation7 + $0x184] ss:$12 sps:$4 sm:$0xff]  }
  0x9d   : > { %1979 = vmatpush3.bf16.msra.mxu1 %v2241_v2 }
  0x9e   : > { %899 = vmatpush2.bf16.msra.mxu0 %v2227_v59  ;;  %1980 = vmatprep.subr.bf16.mxu1 %v2243_v3  ;;  %v2321_v59 = vld [vmem:[#allocation7 + $0x1b4] ss:$12 sps:$4 sm:$0xff]  }
  0x9f   : > { %900 = vmatprep.subr.bf16.mxu0 %v2229_v60  ;;  %v2323_v60 = vld [vmem:[#allocation7 + $0x198] ss:$12 sps:$4 sm:$0xff]  }
  0xa1   : > { %1981 = vmatpush3.bf16.msra.mxu1 %v2244_v6 }
  0xa2   : > { %901 = vmatpush2.bf16.msra.mxu0 %v2232_v63  ;;  %1982 = vmatprep.subr.bf16.mxu1 %v2246_v8  ;;  %v2327_v63 = vld [vmem:[#allocation7 + $0x180] ss:$12 sps:$4 sm:$0xff]  }
  0xa3   : > { %2030 = vmatprep.subr.bf16.mxu0 %v2537_v7 }
  0xa5   : > { %903 = vmatmul.mubr.bf16.vlgmr.msra.gmra.mxu0 %v260_v4  ;;  %1983 = vmatpush3.bf16.msra.mxu1 %v2247_v10  ;;  %v2734_v10 = vld [vmem:[#allocation8] sm:$0xff] }
  0xa6   : > { %2031 = vmatpush3.bf16.msra.mxu0 %v2236_v5  ;;  %2046 = vmatprep.mubr.msk.bf16.mxu0 %vm2538_vm0, %v2537_v7  ;;  %v459_v5 = vlaneseq }
  0xa7   : > { %2032 = vmatprep.subr.bf16.mxu0 %v2537_v7  ;;  %1449 = vmatprep.subr.bf16.mxu1 %v2254_v11 }
  0xa8   : > { %985 = vmatmul.mubr.bf16.vlgmr.msra.gmra.mxu1 %v260_v4  ;;  %v2731_v8 = vshrl.u32 %v459_v5, 7 }
  0xa9   : > { %1450 = vmatpush1.bf16.msra.mxu1 %v2252_v13 }
  0xaa   : > { %2033 = vmatpush3.bf16.msra.mxu0 %v2239_v9  ;;  %1451 = vmatprep.subr.bf16.mxu1 %v2257_v14  ;;  %v461_v9 = vsub.s32 0, %v2731_v8  ;;  %v465_v11 = vsub.s32 4, %v2731_v8 }
  0xab   : > { %2034 = vmatprep.subr.bf16.mxu0 %v2537_v7 }
  0xac   : > { %v466_v13 = vrot.slane %v2734_v10, %v465_v11 }
  0xad   : > { %1452 = vmatpush1.bf16.msra.mxu1 %v2255_v16 }
  0xae   : > { %2035 = vmatpush3.bf16.msra.mxu0 %v2242_v12  ;;  %1453 = vmatprep.subr.bf16.mxu1 %v2260_v17  ;;  %v462_v12 = vrot.slane %v2734_v10, %v461_v9 }
  0xaf   : > { %2036 = vmatprep.subr.bf16.mxu0 %v2537_v7 }
  0xb0   : > { %v477_v14 = vrot.slane %v462_v12, %v461_v9 }
  0xb1   : > { %1454 = vmatpush1.bf16.msra.mxu1 %v2258_v19 }
  0xb2   : > { %2037 = vmatpush3.bf16.msra.mxu0 %v2245_v15  ;;  %1455 = vmatprep.subr.bf16.mxu1 %v2263_v20  ;;  %v481_v15 = vrot.slane %v466_v13, %v461_v9 }
  0xb3   : > { %2038 = vmatprep.subr.bf16.mxu0 %v2537_v7 }
  0xb5   : > { %1456 = vmatpush1.bf16.msra.mxu1 %v2261_v22 }
  0xb6   : > { %2039 = vmatpush3.bf16.msra.mxu0 %v2248_v18  ;;  %1457 = vmatprep.subr.bf16.mxu1 %v2266_v23 }
  0xb7   : > { %2040 = vmatprep.subr.bf16.mxu0 %v2537_v7 }
  0xb9   : > { %1458 = vmatpush1.bf16.msra.mxu1 %v2264_v25 }
  0xba   : > { %2041 = vmatpush3.bf16.msra.mxu0 %v2249_v21  ;;  %1459 = vmatprep.subr.bf16.mxu1 %v2269_v26 }
  0xbb   : > { %2042 = vmatprep.subr.bf16.mxu0 %v2537_v7 }
  0xbd   : > { %1460 = vmatpush1.bf16.msra.mxu1 %v2267_v28  ;;  %v2306_v28 = vld [vmem:[#allocation7 + $0x230] ss:$12 sps:$4 sm:$0xff]  }
  0xbe   : > { %2043 = vmatpush3.bf16.msra.mxu0 %v2250_v24  ;;  %1461 = vmatprep.subr.bf16.mxu1 %v2272_v29 }
  0xbf   : > { %2044 = vmatprep.subr.bf16.mxu0 %v2537_v7 }
  0xc1   : > { %1462 = vmatpush1.bf16.msra.mxu1 %v2270_v30 }
  0xc2   : > { %2045 = vmatpush3.bf16.msra.mxu0 %v2251_v27  ;;  %1463 = vmatprep.subr.bf16.mxu1 %v2275_v31 }
  0xc3   : > { %1490 = vmatprep.subr.bf16.mxu0 %v2299_v46 }
  0xc5   : > { %2047 = vmatmul.mubr.bf16.vlgmr.msra.gmra.mxu0 %v2713_v42  ;;  %1464 = vmatpush1.bf16.msra.mxu1 %v2273_v32  ;;  %v2293_v42 = vld [vmem:[#allocation7 + $0xf4] ss:$12 sps:$4 sm:$0xff]   ;;  %v2310_v32 = vld [vmem:[#allocation7 + $0x218] ss:$12 sps:$4 sm:$0xff]  }
  0xc6   : > { %1522 = vmatprep.mubr.bf16.mxu0 %v2536_v0  ;;  %1465 = vmatprep.subr.bf16.mxu1 %v2278_v33  ;;  %v2288_v0 = vld [vmem:[#allocation7 + $0x108] ss:$12 sps:$4 sm:$0xff]  }
  0xc7   : > { %1491 = vmatpush1.bf16.msra.mxu0 %v2297_v47 }
  0xc8   : > { %1492 = vmatprep.subr.bf16.mxu0 %v2305_v50  ;;  %v2333_v50 = vld [vmem:[#allocation7 + $0x188] ss:$12 sps:$4 sm:$0xff]  }
  0xc9   : > { %1466 = vmatpush2.bf16.msra.mxu1 %v2276_v34  ;;  %v2314_v34 = vld [vmem:[#allocation7 + $0x200] ss:$12 sps:$4 sm:$0xff]  }
  0xca   : > { %1467 = vmatprep.subr.bf16.mxu1 %v2281_v35  ;;  %v2746_v35 = vld [vmem:[#allocation8 + $0x8] sm:$0xf] }
  0xcb   : > { %1493 = vmatpush1.bf16.msra.mxu0 %v2303_v51  ;;  %v2334_v51 = vld [vmem:[#allocation7 + $0x158] ss:$12 sps:$4 sm:$0xff]  }
  0xcc   : > { %1494 = vmatprep.subr.bf16.mxu0 %v2309_v53  ;;  %v2335_v53 = vld [vmem:[#allocation7 + $0x98] ss:$12 sps:$4 sm:$0xff]  }
  0xcd   : > { %1468 = vmatpush2.bf16.msra.mxu1 %v2279_v36  ;;  %v2318_v36 = vld [vmem:[#allocation7 + $0x1e8] ss:$12 sps:$4 sm:$0xff]  }
  0xce   : > { %1469 = vmatprep.subr.bf16.mxu1 %v2284_v37  ;;  %v470_v37 = vrot.slane %v2746_v35, %v461_v9 }
  0xcf   : > { %1495 = vmatpush1.bf16.msra.mxu0 %v2307_v52 }
  0xd0   : > { %1496 = vmatprep.subr.bf16.mxu0 %v2313_v55  ;;  %v2337_v55 = vld [vmem:[#allocation7 + $0x80] ss:$12 sps:$4 sm:$0xff]  }
  0xd1   : > { %1470 = vmatpush2.bf16.msra.mxu1 %v2282_v38  ;;  %v2322_v38 = vld [vmem:[#allocation7 + $0x1d0] ss:$12 sps:$4 sm:$0xff]  }
  0xd2   : > { %1471 = vmatprep.subr.bf16.mxu1 %v2287_v39 }
  0xd3   : > { %1497 = vmatpush1.bf16.msra.mxu0 %v2311_v54  ;;  %v2336_v54 = vld [vmem:[#allocation7 + $0x140] ss:$12 sps:$4 sm:$0xff]  }
  0xd4   : > { %1498 = vmatprep.subr.bf16.mxu0 %v2317_v57  ;;  %v2339_v57 = vld [vmem:[#allocation7 + $0x68] ss:$12 sps:$4 sm:$0xff]  }
  0xd5   : > { %1472 = vmatpush2.bf16.msra.mxu1 %v2285_v40  ;;  %v485_v40 = vrot.slane %v470_v37, %v461_v9 }
  0xd6   : > { %1473 = vmatprep.subr.bf16.mxu1 %v2290_v41  ;;  %v2326_v41 = vld [vmem:[#allocation7 + $0x1b8] ss:$12 sps:$4 sm:$0xff]  }
  0xd7   : > { %1499 = vmatpush1.bf16.msra.mxu0 %v2315_v56  ;;  %v2338_v56 = vld [vmem:[#allocation7 + $0x128] ss:$12 sps:$4 sm:$0xff]  }
  0xd8   : > { %1500 = vmatprep.subr.bf16.mxu0 %v2321_v59  ;;  %v2341_v59 = vld [vmem:[#allocation7 + $0x50] ss:$12 sps:$4 sm:$0xff]  }
  0xd9   : > { %1474 = vmatpush2.bf16.msra.mxu1 %v2288_v0 }
  0xda   : > { %1475 = vmatprep.subr.bf16.mxu1 %v2293_v42 }
  0xdb   : > { %1501 = vmatpush1.bf16.msra.mxu0 %v2319_v58  ;;  %v2340_v58 = vld [vmem:[#allocation7 + $0x110] ss:$12 sps:$4 sm:$0xff]  }
  0xdc   : > { %1502 = vmatprep.subr.bf16.mxu0 %v2325_v61  ;;  %v2344_v61 = vld [vmem:[#allocation7 + $0xe0] ss:$12 sps:$4 sm:$0xff]  }
  0xdd   : > { %1476 = vmatpush2.bf16.msra.mxu1 %v2291_v43 }
  0xde   : > { %1477 = vmatprep.subr.bf16.mxu1 %v2296_v44  ;;  %v2330_v44 = vld [vmem:[#allocation7 + $0x1a0] ss:$12 sps:$4 sm:$0xff]  }
  0xdf   : > { %1503 = vmatpush1.bf16.msra.mxu0 %v2323_v60  ;;  %v2343_v60 = vld [vmem:[#allocation7 + $0x38] ss:$12 sps:$4 sm:$0xff]  }
  0xe0   : > { %1504 = vmatprep.subr.bf16.mxu0 %v2329_v62  ;;  %v2345_v62 = vld [vmem:[#allocation7 + $0x20] ss:$12 sps:$4 sm:$0xff]  }
  0xe1   : > { %1478 = vmatpush2.bf16.msra.mxu1 %v2294_v45 }
  0xe2   : > { %1479 = vmatprep.subr.bf16.mxu1 %v2302_v48  ;;  %v2332_v48 = vld [vmem:[#allocation7 + $0xb0] ss:$12 sps:$4 sm:$0xff]  }
  0xe3   : > { %1505 = vmatpush1.bf16.msra.mxu0 %v2327_v63  ;;  %v2346_v63 = vld [vmem:[#allocation7 + $0xc8] ss:$12 sps:$4 sm:$0xff]  }
  0xe4   : > { %1999 = vmatprep.subr.bf16.mxu0 %v2331_v1  ;;  %v2347_v1 = vld [vmem:[#allocation7 + $0x8] ss:$12 sps:$4 sm:$0xff]  }
  0xe5   : > { %1480 = vmatpush2.bf16.msra.mxu1 %v2300_v49 }
  0xe6   : > { %2050 = vmatprep.subr.bf16.mxu1 %v2537_v7 }
 0x148   : > { %v945_v2 = vpop.f32.mrf.mxu1 }
 0x14a   : > { %v947_v3 = vpop.f32.mrf.mxu1 }
 0x14c   : > { %v949_v4 = vpop.f32.mrf.mxu1 }
 0x14e   : > { %v950_v6 = vpop.f32.mrf.mxu1 }
 0x165   : > { %v904_v16 = vpop.f32.mrf.mxu0 }
 0x166   : > { %v905_v17 = vadd.f32 %v904_v16, %v477_v14 }
 0x167   : > { %v906_v18 = vpop.f32.mrf.mxu0 }
 0x168   : > { %v946_v19 = vadd.f32 %v945_v2, %v905_v17  ;;  %v907_v20 = vadd.f32 %v906_v18, %v481_v15  ;;  %v1984_v26 = vpop.f32.mrf.mxu1  ;;  %v1044_v17 = vsub.s32 5, %v2731_v8  ;;  %v1040_v18 = vsub.s32 1, %v2731_v8 }
 0x169   : > { %v908_v21 = vpop.f32.mrf.mxu0 }
 0x16a   : > { %v948_v22 = vadd.f32 %v947_v3, %v907_v20  ;;  %v1032_v23 = vmax.f32 %v946_v19, 0.0  ;;  %v1985_v30 = vpop.f32.mrf.mxu1  ;;  %v1045_v19 = vrot.slane %v2734_v10, %v1044_v17  ;;  %v1041_v20 = vrot.slane %v2734_v10, %v1040_v18 }
 0x16b   : > { %v909_v24 = vpop.f32.mrf.mxu0  ;;  %v1986_v39 = vadd.f32 %v1985_v30, %v1984_v26 }
 0x16c   : > { %v1033_v25 = vmax.f32 %v948_v22, 0.0  ;;  %v2739_v29 = vpack.c.bf16 %v1032_v23, %v1032_v23  ;;  %v1987_v31 = vpop.f32.mrf.mxu1  ;;  %v1060_v21 = vrot.slane %v1045_v19, %v1040_v18  ;;  %v1049_v22 = vrot.slane %v2746_v35, %v1040_v18 }
 0x16d   : > { %v987_v0 = vadd.f32 %v1986_v39, %v485_v40  ;;  %v1056_v23 = vrot.slane %v1041_v20, %v1040_v18 }
 0x16e   : > { %v1036_v27 = vpack.c.bf16 %v1033_v25, %v1033_v25  ;;  %v1988_v33 = vpop.f32.mrf.mxu1  ;;  %v1064_v26 = vrot.slane %v1049_v22, %v1040_v18 }
 0x170   : > { %1481 = vmatprep.mubr.bf16.mxu1 %v1036_v27 }
 0x171   : > { %1482 = vmatmul.mubr.bf16.vlgmr.msra.gmra.mxu1 %v2739_v29 }
 0x172   : > { %2051 = vmatpush3.bf16.msra.mxu1 %v2306_v28  ;;  %2066 = vmatprep.mubr.msk.bf16.mxu1 %vm2538_vm0, %v2537_v7 }
 0x173   : > { %2052 = vmatprep.subr.bf16.mxu1 %v2537_v7 }
 0x176   : > { %2053 = vmatpush3.bf16.msra.mxu1 %v2310_v32 }
 0x177   : > { %2054 = vmatprep.subr.bf16.mxu1 %v2537_v7 }
 0x17a   : > { %2055 = vmatpush3.bf16.msra.mxu1 %v2314_v34 }
 0x17b   : > { %2056 = vmatprep.subr.bf16.mxu1 %v2537_v7 }
 0x17e   : > { %2057 = vmatpush3.bf16.msra.mxu1 %v2318_v36 }
 0x17f   : > { %2058 = vmatprep.subr.bf16.mxu1 %v2537_v7 }
 0x182   : > { %2059 = vmatpush3.bf16.msra.mxu1 %v2322_v38 }
 0x183   : > { %2060 = vmatprep.subr.bf16.mxu1 %v2537_v7 }
 0x185   : > { %v1026_v42 = vpop.f32.mrf.mxu0 }
 0x186   : > { %v1027_v43 = vadd.f32 %v1026_v42, %v987_v0  ;;  %2061 = vmatpush3.bf16.msra.mxu1 %v2326_v41 }
 0x187   : > { %v2048_v45 = vpop.f32.mrf.mxu0  ;;  %2062 = vmatprep.subr.bf16.mxu1 %v2537_v7 }
 0x188   : > { %v1034_v46 = vmax.f32 %v1027_v43, 0.0 }
 0x189   : > { %v1029_v47 = vpop.f32.mrf.mxu0 }
 0x18a   : > { %v1037_v49 = vpack.c.bf16 %v1034_v46, %v1034_v46  ;;  %2063 = vmatpush3.bf16.msra.mxu1 %v2330_v44 }
 0x18b   : > { %v2049_v52 = vpop.f32.mrf.mxu0  ;;  %2064 = vmatprep.subr.bf16.mxu1 %v2537_v7  ;;  %v2342_v7 = vld [vmem:[#allocation7 + $0xf8] ss:$12 sps:$4 sm:$0xff]  }
 0x18c   : > { %1523 = vmatmul.mubr.bf16.vlgmr.msra.gmra.mxu0 %v1037_v49  ;;  %v1639_v52 = vsub.s32 6, %v2731_v8 }
 0x18d   : > { %2000 = vmatpush3.bf16.msra.mxu0 %v2332_v48  ;;  %1563 = vmatprep.mubr.bf16.mxu0 %v1036_v27 }
 0x18e   : > { %2065 = vmatpush3.bf16.msra.mxu1 %v2333_v50  ;;  %2001 = vmatprep.subr.bf16.mxu0 %v2334_v51  ;;  %v1635_v51 = vsub.s32 2, %v2731_v8 }
 0x191   : > { %2002 = vmatpush3.bf16.msra.mxu0 %v2335_v53  ;;  %2067 = vmatmul.mubr.bf16.vlgmr.msra.gmra.mxu1 %v1037_v49  ;;  %v1665_v53 = vsub.s32 3, %v2731_v8 }
 0x192   : > { %2003 = vmatprep.subr.bf16.mxu0 %v2336_v54  ;;  %v1669_v54 = vsub.s32 7, %v2731_v8 }
 0x195   : > { %2004 = vmatpush3.bf16.msra.mxu0 %v2337_v55  ;;  %v1644_v55 = vrot.slane %v2746_v35, %v1635_v51 }
 0x196   : > { %2005 = vmatprep.subr.bf16.mxu0 %v2338_v56  ;;  %v1636_v56 = vrot.slane %v2734_v10, %v1635_v51 }
 0x199   : > { %2006 = vmatpush3.bf16.msra.mxu0 %v2339_v57  ;;  %v1640_v57 = vrot.slane %v2734_v10, %v1639_v52 }
 0x19a   : > { %2007 = vmatprep.subr.bf16.mxu0 %v2340_v58  ;;  %v1674_v58 = vrot.slane %v2746_v35, %v1665_v53 }
 0x19d   : > { %2008 = vmatpush3.bf16.msra.mxu0 %v2341_v59  ;;  %v1666_v59 = vrot.slane %v2734_v10, %v1665_v53 }
 0x19e   : > { %2009 = vmatprep.subr.bf16.mxu0 %v2342_v7  ;;  %v1670_v7 = vrot.slane %v2734_v10, %v1669_v54 }
 0x19f   : > { %v1681_v8 = vrot.slane %v1666_v59, %v1665_v53 }
 0x1a1   : > { %2010 = vmatpush3.bf16.msra.mxu0 %v2343_v60  ;;  %v1659_v60 = vrot.slane %v1644_v55, %v1635_v51 }
 0x1a2   : > { %2011 = vmatprep.subr.bf16.mxu0 %v2344_v61  ;;  %v1651_v61 = vrot.slane %v1636_v56, %v1635_v51 }
 0x1a5   : > { %2012 = vmatpush3.bf16.msra.mxu0 %v2345_v62  ;;  %v1655_v62 = vrot.slane %v1640_v57, %v1635_v51 }
 0x1a6   : > { %2013 = vmatprep.subr.bf16.mxu0 %v2346_v63 }
 0x1a9   : > { %2014 = vmatpush3.bf16.msra.mxu0 %v2347_v1  ;;  %v1689_v1 = vrot.slane %v1674_v58, %v1665_v53 }
 0x1ac   : > { %1564 = vmatmul.mubr.bf16.vlgmr.msra.gmra.mxu0 %v2739_v29 }
 0x231   : > { %v1483_v2 = vpop.f32.mrf.mxu1 }
 0x232   : > { %v1484_v28 = vadd.f32 %v1483_v2, %v1056_v23 }
 0x233   : > { %v1485_v3 = vpop.f32.mrf.mxu1 }
 0x234   : > { %v1486_v25 = vadd.f32 %v1485_v3, %v1060_v21 }
 0x235   : > { %v1487_v4 = vpop.f32.mrf.mxu1 }
 0x237   : > { %v1488_v5 = vpop.f32.mrf.mxu1 }
 0x238   : > { %v1685_v5 = vrot.slane %v1670_v7, %v1665_v53 }
 0x24c   : > { %v1524_v6 = vpop.f32.mrf.mxu0 }
 0x24d   : > { %v1525_v32 = vadd.f32 %v1524_v6, %v1484_v28 }
 0x24e   : > { %v1526_v9 = vpop.f32.mrf.mxu0 }
 0x24f   : > { %v1527_v29 = vadd.f32 %v1526_v9, %v1486_v25 }
 0x250   : > { %v1528_v11 = vpop.f32.mrf.mxu0 }
 0x251   : > { %v1605_v12 = vpop.f32.mrf.mxu1  ;;  %v1611_v37 = vadd.f32 %v1527_v29, %v1525_v32 }
 0x252   : > { %v1529_v13 = vpop.f32.mrf.mxu0 }
 0x253   : > { %v2068_v14 = vpop.f32.mrf.mxu1 }
 0x255   : > { %v1608_v15 = vpop.f32.mrf.mxu1 }
 0x257   : > { %v2069_v16 = vpop.f32.mrf.mxu1 }
 0x26c   : > { %v2015_v24 = vpop.f32.mrf.mxu0 }
 0x26e   : > { %v2016_v27 = vpop.f32.mrf.mxu0 }
 0x26f   : > { %v2017_v30 = vadd.f32 %v2016_v27, %v2015_v24 }
 0x270   : > { %v2018_v31 = vpop.f32.mrf.mxu0 }
 0x271   : > { %v1566_v33 = vadd.f32 %v2017_v30, %v1064_v26 }
 0x272   : > { %v2019_v34 = vpop.f32.mrf.mxu0 }
 0x273   : > { %v1606_v36 = vadd.f32 %v1605_v12, %v1566_v33 }
 0x275   : > { %v1612_v38 = vadd.f32 %v1611_v37, %v1606_v36 }
 0x277   : > { %1613 = vadd.xlane.f32.xlu0 %v1612_v38 }
 0x300   : > { %v1614_v39 = vpop.xlane.xlu0 %1613 }
 0x301   : > { %v1616_v40 = vmul.f32 0.0026041667, %v1614_v39 }
 0x303   : > { %v1617_v41 = vsub.f32 %v1525_v32, %v1616_v40  ;;  %v1618_v0 = vsub.f32 %v1527_v29, %v1616_v40  ;;  %v1619_v42 = vsub.f32 %v1606_v36, %v1616_v40 }
 0x305   : > { %v1620_v43 = vmul.f32 %v1617_v41, %v1617_v41  ;;  %v1621_v44 = vmul.f32 %v1618_v0, %v1618_v0  ;;  %v1622_v45 = vmul.f32 %v1619_v42, %v1619_v42 }
 0x307   : > { %v1623_v46 = vadd.f32 %v1621_v44, %v1620_v43 }
 0x309   : > { %v1624_v47 = vadd.f32 %v1623_v46, %v1622_v45 }
 0x30b   : > { %1625 = vadd.xlane.f32.xlu0 %v1624_v47 }
 0x394   : > { %v1626_v48 = vpop.xlane.xlu0 %1625 }
 0x395   : > { %v1627_v49 = vmul.f32 0.0026041667, %v1626_v48 }
 0x397   : > { %v1628_v50 = vadd.f32 1e-05, %v1627_v49 }
 0x399   : > { %2348 = vrsqrt.f32 %v1628_v50 }
 0x3a6   : > { %v2349_v63 = vpop.eup %2348 }
 0x3a7   : > { %v1630_v2 = vmul.f32 %v2349_v63, %v1617_v41  ;;  %v1631_v3 = vmul.f32 %v2349_v63, %v1618_v0  ;;  %v1632_v4 = vmul.f32 %v2349_v63, %v1619_v42 }
 0x3a9   : > { %v1660_v35 = vmul.f32 %v1651_v61, %v1630_v2  ;;  %v1661_v6 = vmul.f32 %v1655_v62, %v1631_v3  ;;  %v1662_v9 = vmul.f32 %v1659_v60, %v1632_v4 }
 0x3ab   : > { %v1690_v10 = vadd.f32 %v1681_v8, %v1660_v35  ;;  %v1691_v11 = vadd.f32 %v1685_v5, %v1661_v6  ;;  %v1692_v12 = vadd.f32 %v1689_v1, %v1662_v9 }
 0x3ad   : > { %1693 = vst [vmem:[%s255_s23] sm:$0xff] %v1690_v10  ;;  %1694 = vst [vmem:[%s255_s23 + $0x8] sm:$0xff] %v1691_v11 }
 0x3ae   : > { %1695 = vst [vmem:[%s255_s23 + $0x10] sm:$0xff] %v1692_v12 }
 0x3af   : > { %2469 = shalt.err (!%p2466_p9)
}
 0x3b0   : > { %s2470_s29 = scalar_lea.hbm %s2776_s12, 384  ;;  %s2474_s10 = scalar_lea.hbm %s2823_s4, 768 }
 0x3b1   : > { %p2471_p13 = scmp.ne.s32.totalorder %s2776_s12, %s2470_s29  ;;  %p2475_p11 = scmp.lt.s32.totalorder %s2776_s12, %s2823_s4 }
 0x3b2   : > { %p2476_p1 = scmp.lt.s32.totalorder %s2474_s10, %s2470_s29 }
 0x3b3   : > { %p2472_p8 = pnand %p2471_p13, %p2841_p6 }
 0x3b4   : > { %p2477_p2 = por %p2476_p1, %p2475_p11 }
 0x3b5   : > { %p2473_p10 = pneg %p2472_p8 }
 0x3b7   : > { %p2478_p4 = pnand %p2477_p2, %p2473_p10 }
 0x3b9   : > { %2481 = shalt.err (!%p2478_p4)
}
 0x3ba   : > { %2088 = dma.vmem_to_hbm [thread:$0]  (%p2841_p6), %s2778_s6, 384, %s2776_s12, %s1697_s19  }
 0x3bb PF: > { %s1723_s20 = sand.u32 1, %s2516_s15   ;;  %p2842_p12 = scmp.ne.s32.totalorder %s2829_s22, 0 }
 0x3bc   : > { %p2843_p0 = scmp.ge.s32.totalorder %s2528_s18, 2  ;;  %s1724_s21 = scalar_lea.sflag [#allocation4], %s1723_s20 }
 0x3be   : > { %p2105_p5 = pnand %p2843_p0, %p2842_p12 }
 0x3c0   : > { %p2106_p3 = pneg %p2105_p5 }
 0x3c2   : > { %2511 = dma.done.wait (%p2106_p3), %s1724_s21, 384  }
 0x3c3   : > { %2513 = vsyncadd (%p2106_p3), %s1724_s21, 4294966912  ;;  %p19_p7 = scmp.ge.s32.totalorder %s2645_s24, 4   ;;  %s2844_s15 = smov %s2520_s16 }
 0x3c4   : > { %s2845_s16 = smov %s2524_s17  ;;  %s2846_s17 = smov %s2655_s27 }
 0x3c5   : > { %s2847_s18 = smov %s2645_s24  ;;  %21 = sbr.rel (!%p19_p7) target bundleno = 7 (0x7), region = 93 }
 0x3ca   :  { %1729 = vsyncpa [#allocation3], 1 }
 0x3cb   :  { %1731 = vsyncpa [#allocation3 + $0x1], 1 }
 0x3cc   :  { %1732 = vsyncpa [#allocation6], 1 }
 0x3cd   :  { %1733 = vsyncpa [#allocation9], 1 }
 0x3ce   :  { %1734 = vsyncpa [#allocation4], 1 }
 0x3cf   :  { %1736 = vsyncpa [#allocation4 + $0x1], 1 }

</bundles_post_ra>
